<compile_context>
chip_gen: v6e
topology: v6e:2x2x1
jax: 0.10.0
libtpu: 0.0.40
codegen_flags: <defaults>
</compile_context>

<pallas_src>
import functools

import jax
import jax.numpy as jnp
import numpy as np
from jax.experimental import pallas as pl
from jax.experimental.pallas import tpu as pltpu

P = 8            # batch rows packed per lane "super-row"
LANE_PACK = 16   # pad feature/output dims to multiples of 16 -> P*dim multiple of 128


def _round_up(a: int, m: int) -> int:
    return (a + m - 1) // m * m


def _mlp_kernel(x_ref, w1_ref, b1_ref, w2_ref, b2_ref, w3_ref, b3_ref, o_ref):
    """Fused 2-layer ReLU backbone + fused state/reward heads (lane-packed)."""
    # Layer 1: bf16 operands, f32 accumulation on the MXU.
    h = jnp.dot(x_ref[...], w1_ref[...], preferred_element_type=jnp.float32)
    h = jnp.maximum(h + b1_ref[...], 0.0)
    # Layer 2 (backbone output / latent).
    h = jnp.dot(h.astype(w2_ref.dtype), w2_ref[...],
                preferred_element_type=jnp.float32)
    h = jnp.maximum(h + b2_ref[...], 0.0)
    # Fused heads: [state_layer | reward_layer | zero-pad] -> 128-lane-dense store.
    out = jnp.dot(h.astype(w3_ref.dtype), w3_ref[...],
                  preferred_element_type=jnp.float32)
    o_ref[...] = (out + b3_ref[...]).astype(o_ref.dtype)


def _choose_packed_tile(bp_needed: int, min_tile: int = 128, max_tile: int = 1024) -> int:
    """Packed-row (8-batch-row) tile size.

    * Small batches: a single grid step (no per-step pipeline overhead, no
      re-pushing the RHS weights into the MXU for a handful of rows).
    * Large batches: >=2 balanced tiles of >= min_tile packed rows so the v7x
      megacore split gets full-sized, balanced work per TensorCore; tiles are
      capped at max_tile so the double-buffered working set stays well inside
      scoped VMEM on all generations (v7x has only 64 MiB / core).
    """
    if bp_needed < 2 * min_tile:
        return max(8, _round_up(bp_needed, 8))
    n_tiles = max(2, pl.cdiv(bp_needed, max_tile))
    return _round_up(pl.cdiv(bp_needed, n_tiles), 8)


def pack_params(params, *, compute_dtype=jnp.bfloat16):
    """One-time packing of the weights for the lane-packed kernel (hoisted out
    of the per-call path): block-diagonal kron replication, head fusion,
    padding to 128-lane multiples, and the bf16 operand cast."""
    w1, b1, w2, b2, ws, bs, wr, br = params
    in_dim = int(w1.shape[0])
    out_total = int(ws.shape[1]) + int(wr.shape[1])

    d_pad = _round_up(in_dim, LANE_PACK)        # P*d_pad is a multiple of 128
    out_pad = _round_up(out_total, LANE_PACK)   # P*out_pad is a multiple of 128

    eye_p = jnp.eye(P, dtype=jnp.float32)
    pack_w = lambda w: jnp.kron(eye_p, jnp.asarray(w, jnp.float32)).astype(compute_dtype)
    # Biases stay f32 (VPU add, negligible footprint).
    pack_b = lambda b: jnp.tile(jnp.reshape(jnp.asarray(b, jnp.float32), (1, -1)), (1, P))

    w1_pad = jnp.pad(jnp.asarray(w1, jnp.float32), ((0, d_pad - in_dim), (0, 0)))
    w3 = jnp.concatenate([jnp.asarray(ws, jnp.float32),
                          jnp.asarray(wr, jnp.float32)], axis=1)
    w3_pad = jnp.pad(w3, ((0, 0), (0, out_pad - out_total)))
    b3 = jnp.concatenate([jnp.reshape(jnp.asarray(bs, jnp.float32), (1, -1)),
                          jnp.reshape(jnp.asarray(br, jnp.float32), (1, -1))], axis=1)
    b3_pad = jnp.pad(b3, ((0, 0), (0, out_pad - out_total)))

    return (pack_w(w1_pad), pack_b(b1),
            pack_w(w2), pack_b(b2),
            pack_w(w3_pad), pack_b(b3_pad))


def reward_diffusion_forward(x, obs, step, packed, actions=None, *,
                             obs_dim, batch_tile=None):
    """Pallas forward of RewardDiffusionModel.

    packed = pack_params(params). Returns (state_output [B, obs_dim],
    reward_output [B, 1]).
    """
    w1_p, b1_p, w2_p, b2_p, w3_p, b3_p = packed
    compute_dtype = w1_p.dtype

    x = jnp.asarray(x, jnp.float32)
    obs = jnp.asarray(obs, jnp.float32)
    step = jnp.asarray(step, jnp.float32)

    if actions is not None:
        actions = jnp.asarray(actions, jnp.float32).reshape(actions.shape[0], -1)
        # torch.cat([x, obs, step, actions], dim=1): one cheap XLA concat ->
        # a single lane-dense input DMA stream for the kernel.
        inp = jnp.concatenate([x, obs, step, actions], axis=1)
    else:
        inp = obs

    B, in_dim = int(inp.shape[0]), int(inp.shape[1])
    d_pad = w1_p.shape[0] // P
    assert _round_up(in_dim, LANE_PACK) == d_pad, "backbone input dim mismatch"

    out_pad_p = int(w3_p.shape[1])          # P * out_pad
    out_pad = out_pad_p // P
    out_total = obs_dim + 1
    assert out_total <= out_pad, "head output dim mismatch"

    # ---- batch packing: 8 rows per packed row so tiny feature dims become lane-dense
    bp_needed = pl.cdiv(B, P)
    if batch_tile is not None:
        assert batch_tile % (P * 8) == 0, "batch_tile must be a multiple of 64"
        tp = min(batch_tile // P, _round_up(bp_needed, 8))
    else:
        tp = _choose_packed_tile(bp_needed)
    bp = _round_up(bp_needed, tp)
    b_pad = bp * P

    # Zero-pad batch + feature dims, cast operands to bf16, contiguous reshape.
    inp = jnp.pad(inp, ((0, b_pad - B), (0, d_pad - in_dim))).astype(compute_dtype)
    inp_p = inp.reshape(bp, P * d_pad)

    grid = (bp // tp,)

    def const_spec(a):
        # Constant blocks (weights/biases): same block index every step, so the
        # pipeline fetches them once.
        # TODO(synk): pipeline_mode=pl.Buffered(1) would single-buffer these
        # (~0.5 MiB saved); omitted since the bf16 weight footprint is tiny.
        return pl.BlockSpec(a.shape, lambda i: (0, 0))

    out_p = pl.pallas_call(
        _mlp_kernel,
        out_shape=jax.ShapeDtypeStruct((bp, out_pad_p), jnp.float32),
        grid_spec=pltpu.PrefetchScalarGridSpec(
            num_scalar_prefetch=0,
            grid=grid,
            in_specs=[pl.BlockSpec((tp, P * d_pad), lambda i: (i, 0)),
                      const_spec(w1_p), const_spec(b1_p),
                      const_spec(w2_p), const_spec(b2_p),
                      const_spec(w3_p), const_spec(b3_p)],
            out_specs=pl.BlockSpec((tp, out_pad_p), lambda i: (i, 0)),
        ),
        compiler_params=pltpu.CompilerParams(
            dimension_semantics=("parallel",),
            vmem_limit_bytes=32 * 1024 * 1024),  # explicit: v5e default is 16 MiB
    )(inp_p, w1_p, b1_p, w2_p, b2_p, w3_p, b3_p)

    out = out_p.reshape(b_pad, out_pad)[:B, :out_total]
    return out[:, :obs_dim], out[:, obs_dim:]


def init_params(key, in_dim, hidden_dim, latent_dim, obs_dim):
    """PyTorch-style uniform(+-1/sqrt(fan_in)) initialization."""
    ks = jax.random.split(key, 8)

    def lin(kw, kb, fan_in, fan_out):
        bound = 1.0 / float(np.sqrt(fan_in))
        w = jax.random.uniform(kw, (fan_in, fan_out), jnp.float32, -bound, bound)
        b = jax.random.uniform(kb, (1, fan_out), jnp.float32, -bound, bound)
        return w, b

    w1, b1 = lin(ks[0], ks[1], in_dim, hidden_dim)        # backbone layer 1
    w2, b2 = lin(ks[2], ks[3], hidden_dim, latent_dim)    # backbone layer 2 (output_dim)
    ws, bs = lin(ks[4], ks[5], latent_dim, obs_dim)       # state_layer
    wr, br = lin(ks[6], ks[7], latent_dim, 1)             # reward_layer
    return (w1, b1, w2, b2, ws, bs, wr, br)


def reference_forward(x, obs, step, params, actions=None):
    w1, b1, w2, b2, ws, bs, wr, br = params
    if actions is not None:
        inp = jnp.concatenate(
            [x, obs, step, actions.reshape(actions.shape[0], -1)], axis=1)
    else:
        inp = obs
    hp = jax.lax.Precision.HIGHEST
    h = jnp.maximum(jnp.dot(inp, w1, precision=hp) + b1, 0.0)
    h = jnp.maximum(jnp.dot(h, w2, precision=hp) + b2, 0.0)
    return (jnp.dot(h, ws, precision=hp) + bs,
            jnp.dot(h, wr, precision=hp) + br)


if __name__ == "__main__":
    # Small shapes consistent with the module:
    #   x [B, obs_dim] (noisy target), obs [B, obs_dim], step [B, 1], actions [B, act_dim]
    B, obs_dim, action_dim = 256, 15, 6
    hidden_dim, latent_dim = 64, 32
    in_dim = obs_dim + obs_dim + 1 + action_dim

    key = jax.random.PRNGKey(0)
    kx, ko, kt, ka, kp = jax.random.split(key, 5)
    x = jax.random.normal(kx, (B, obs_dim), dtype=jnp.float32)
    obs = jax.random.normal(ko, (B, obs_dim), dtype=jnp.float32)
    step = jax.random.uniform(kt, (B, 1), dtype=jnp.float32)
    actions = jax.random.normal(ka, (B, action_dim), dtype=jnp.float32)

    params = init_params(kp, in_dim, hidden_dim, latent_dim, obs_dim)
    packed = pack_params(params)                     # one-time weight packing
    fwd = jax.jit(functools.partial(reward_diffusion_forward, obs_dim=obs_dim))

    state_out, reward_out = fwd(x, obs, step, packed, actions)
    state_out = jax.block_until_ready(state_out)
    reward_out = jax.block_until_ready(reward_out)

    state_ref, reward_ref = reference_forward(x, obs, step, params, actions)

    assert state_out.shape == (B, obs_dim)
    assert reward_out.shape == (B, 1)
    # bf16 MXU operands (f32 accumulation) vs f32 HIGHEST reference: relaxed tol.
    assert jnp.allclose(state_out, state_ref, atol=2e-2, rtol=2e-2)
    assert jnp.allclose(reward_out, reward_ref, atol=2e-2, rtol=2e-2)

    print("KERNEL_OK")
</pallas_src>

<mosaic_0001>
module attributes {stable_mosaic.version = 11 : i64} {
  func.func @_mlp_kernel(%arg0: i32, %arg1: memref<32x384xbf16, #tpu.memory_space<vmem>>, %arg2: memref<384x512xbf16, #tpu.memory_space<vmem>>, %arg3: memref<1x512xf32, #tpu.memory_space<vmem>>, %arg4: memref<512x256xbf16, #tpu.memory_space<vmem>>, %arg5: memref<1x256xf32, #tpu.memory_space<vmem>>, %arg6: memref<256x128xbf16, #tpu.memory_space<vmem>>, %arg7: memref<1x128xf32, #tpu.memory_space<vmem>>, %arg8: memref<32x128xf32, #tpu.memory_space<vmem>>) attributes {dimension_semantics = [#tpu.dimension_semantics<parallel>], iteration_bounds = array<i64: 1>, scalar_prefetch = 0 : i64, scratch_operands = 0 : i64, tpu.core_type = #tpu.core_type<tc>, window_params = [{transform_indices = @transform_0, window_bounds = array<i64: 32, 384>}, {pipeline_mode = #tpu.pipeline_mode<synchronous>, transform_indices = @transform_1, window_bounds = array<i64: 384, 512>}, {pipeline_mode = #tpu.pipeline_mode<synchronous>, transform_indices = @transform_2, window_bounds = array<i64: 1, 512>}, {pipeline_mode = #tpu.pipeline_mode<synchronous>, transform_indices = @transform_3, window_bounds = array<i64: 512, 256>}, {pipeline_mode = #tpu.pipeline_mode<synchronous>, transform_indices = @transform_4, window_bounds = array<i64: 1, 256>}, {pipeline_mode = #tpu.pipeline_mode<synchronous>, transform_indices = @transform_5, window_bounds = array<i64: 256, 128>}, {pipeline_mode = #tpu.pipeline_mode<synchronous>, transform_indices = @transform_6, window_bounds = array<i64: 1, 128>}, {transform_indices = @transform_7, window_bounds = array<i64: 32, 128>}]} {
    %c0 = arith.constant 0 : index
    %c0_0 = arith.constant 0 : index
    %0 = vector.load %arg1[%c0, %c0_0] : memref<32x384xbf16, #tpu.memory_space<vmem>>, vector<32x384xbf16>
    %c0_1 = arith.constant 0 : index
    %c0_2 = arith.constant 0 : index
    %1 = vector.load %arg2[%c0_1, %c0_2] : memref<384x512xbf16, #tpu.memory_space<vmem>>, vector<384x512xbf16>
    %cst = arith.constant dense<0.000000e+00> : vector<32x512xf32>
    %2 = tpu.matmul %0, %1, %cst {dimension_numbers = #tpu.dot_dimension_numbers<[1], [0], [0], [1], [0, 0, 1, 1], [], []>} : vector<32x384xbf16>, vector<384x512xbf16>, vector<32x512xf32> -> vector<32x512xf32>
    %c0_3 = arith.constant 0 : index
    %c0_4 = arith.constant 0 : index
    %3 = vector.load %arg3[%c0_3, %c0_4] : memref<1x512xf32, #tpu.memory_space<vmem>>, vector<1x512xf32>
    %4 = vector.broadcast %3 : vector<1x512xf32> to vector<32x512xf32>
    %5 = arith.addf %2, %4 : vector<32x512xf32>
    %cst_5 = arith.constant 0.000000e+00 : f32
    %6 = vector.broadcast %cst_5 : f32 to vector<32x512xf32>
    %7 = arith.maximumf %5, %6 : vector<32x512xf32>
    %8 = arith.truncf %7 : vector<32x512xf32> to vector<32x512xbf16>
    %c0_6 = arith.constant 0 : index
    %c0_7 = arith.constant 0 : index
    %9 = vector.load %arg4[%c0_6, %c0_7] : memref<512x256xbf16, #tpu.memory_space<vmem>>, vector<512x256xbf16>
    %cst_8 = arith.constant dense<0.000000e+00> : vector<32x256xf32>
    %10 = tpu.matmul %8, %9, %cst_8 {dimension_numbers = #tpu.dot_dimension_numbers<[1], [0], [0], [1], [0, 0, 1, 1], [], []>} : vector<32x512xbf16>, vector<512x256xbf16>, vector<32x256xf32> -> vector<32x256xf32>
    %c0_9 = arith.constant 0 : index
    %c0_10 = arith.constant 0 : index
    %11 = vector.load %arg5[%c0_9, %c0_10] : memref<1x256xf32, #tpu.memory_space<vmem>>, vector<1x256xf32>
    %12 = vector.broadcast %11 : vector<1x256xf32> to vector<32x256xf32>
    %13 = arith.addf %10, %12 : vector<32x256xf32>
    %cst_11 = arith.constant 0.000000e+00 : f32
    %14 = vector.broadcast %cst_11 : f32 to vector<32x256xf32>
    %15 = arith.maximumf %13, %14 : vector<32x256xf32>
    %16 = arith.truncf %15 : vector<32x256xf32> to vector<32x256xbf16>
    %c0_12 = arith.constant 0 : index
    %c0_13 = arith.constant 0 : index
    %17 = vector.load %arg6[%c0_12, %c0_13] : memref<256x128xbf16, #tpu.memory_space<vmem>>, vector<256x128xbf16>
    %cst_14 = arith.constant dense<0.000000e+00> : vector<32x128xf32>
    %18 = tpu.matmul %16, %17, %cst_14 {dimension_numbers = #tpu.dot_dimension_numbers<[1], [0], [0], [1], [0, 0, 1, 1], [], []>} : vector<32x256xbf16>, vector<256x128xbf16>, vector<32x128xf32> -> vector<32x128xf32>
    %c0_15 = arith.constant 0 : index
    %c0_16 = arith.constant 0 : index
    %19 = vector.load %arg7[%c0_15, %c0_16] : memref<1x128xf32, #tpu.memory_space<vmem>>, vector<1x128xf32>
    %20 = vector.broadcast %19 : vector<1x128xf32> to vector<32x128xf32>
    %21 = arith.addf %18, %20 : vector<32x128xf32>
    %c0_17 = arith.constant 0 : index
    %c0_18 = arith.constant 0 : index
    %22 = vector.load %arg8[%c0_17, %c0_18] : memref<32x128xf32, #tpu.memory_space<vmem>>, vector<32x128xf32>
    tpu.vector_store %arg8[%c0_17, %c0_18], %21 {strides = array<i32>} : memref<32x128xf32, #tpu.memory_space<vmem>>, vector<32x128xf32>,
    return
  }
  func.func @transform_0(%arg0: i32) -> (i32, i32) {
    %c0_i32 = arith.constant 0 : i32
    %c0_i32_0 = arith.constant 0 : i32
    return %arg0, %c0_i32 : i32, i32
  }
  func.func @transform_1(%arg0: i32) -> (i32, i32) {
    %c0_i32 = arith.constant 0 : i32
    %c0_i32_0 = arith.constant 0 : i32
    %c0_i32_1 = arith.constant 0 : i32
    return %c0_i32, %c0_i32_0 : i32, i32
  }
  func.func @transform_2(%arg0: i32) -> (i32, i32) {
    %c0_i32 = arith.constant 0 : i32
    %c0_i32_0 = arith.constant 0 : i32
    %c0_i32_1 = arith.constant 0 : i32
    return %c0_i32, %c0_i32_0 : i32, i32
  }
  func.func @transform_3(%arg0: i32) -> (i32, i32) {
    %c0_i32 = arith.constant 0 : i32
    %c0_i32_0 = arith.constant 0 : i32
    %c0_i32_1 = arith.constant 0 : i32
    return %c0_i32, %c0_i32_0 : i32, i32
  }
  func.func @transform_4(%arg0: i32) -> (i32, i32) {
    %c0_i32 = arith.constant 0 : i32
    %c0_i32_0 = arith.constant 0 : i32
    %c0_i32_1 = arith.constant 0 : i32
    return %c0_i32, %c0_i32_0 : i32, i32
  }
  func.func @transform_5(%arg0: i32) -> (i32, i32) {
    %c0_i32 = arith.constant 0 : i32
    %c0_i32_0 = arith.constant 0 : i32
    %c0_i32_1 = arith.constant 0 : i32
    return %c0_i32, %c0_i32_0 : i32, i32
  }
  func.func @transform_6(%arg0: i32) -> (i32, i32) {
    %c0_i32 = arith.constant 0 : i32
    %c0_i32_0 = arith.constant 0 : i32
    %c0_i32_1 = arith.constant 0 : i32
    return %c0_i32, %c0_i32_0 : i32, i32
  }
  func.func @transform_7(%arg0: i32) -> (i32, i32) {
    %c0_i32 = arith.constant 0 : i32
    %c0_i32_0 = arith.constant 0 : i32
    return %arg0, %c0_i32 : i32, i32
  }
}

</mosaic_0001>

<bundles_post_ra>
// kernel: reward_diffusion_forward.1
= control target key start
LH: loop header
LB: loop body
LE: loop exit
PB: predicated region body
PF: predicated region fallthrough
CT: control target
= control target key end

     0   :  { %12 = vsyncpa [#allocation3], 0  ;;  %s2630_s0 = inlined_call_operand.vmem [shape: bf16[32,384], index: 0, kind: input, shape index: {}]   ;;  %s2631_s1 = inlined_call_operand.vmem [shape: bf16[384,512], index: 1, kind: input, shape index: {}]   ;;  %s2632_s2 = inlined_call_operand.vmem [shape: f32[1,512], index: 2, kind: input, shape index: {}]   ;;  %s2633_s3 = inlined_call_operand.hbm [shape: bf16[512,256], index: 3, kind: input, shape index: {}]   ;;  %s2634_s4 = inlined_call_operand.hbm [shape: f32[1,256], index: 4, kind: input, shape index: {}]   ;;  %s2635_s5 = inlined_call_operand.hbm [shape: bf16[256,128], index: 5, kind: input, shape index: {}]   ;;  %s2636_s6 = inlined_call_operand.vmem [shape: f32[1,128], index: 6, kind: input, shape index: {}]   ;;  %s2637_s7 = inlined_call_operand.vmem [shape: f32[32,128], index: 7, kind: output, shape index: {}]  }
   0x1   :  { %13 = vsyncpa [#allocation5], 0  ;;  %s2211_s24 = smov [#allocation4]   ;;  %s2212_s26 = smov [#allocation2]  }
   0x2   :  { %s38_s25 = sshll.u32 %s2211_s24, 4  ;;  %s25_s27 = sshll.u32 %s2212_s26, 4  ;;  %s39_s25 = int_to_ptr.vmem [resolvable:$true] %s38_s25  ;;  %s26_s27 = int_to_ptr.vmem [resolvable:$true] %s25_s27 }
   0x3   :  { %s2155_s28 = scalar_lea.vmem %s39_s25, 32  ;;  %p2160_p1 = scmp.lt.s32.totalorder %s39_s25, %s39_s25 }
   0x4   :  { %p2156_p0 = scmp.ne.s32.totalorder %s39_s25, %s2155_s28  ;;  %p2161_p2 = scmp.lt.s32.totalorder %s2155_s28, %s2155_s28 }
   0x6   :  { %p2162_p3 = por %p2161_p2, %p2160_p1 }
   0x8   :  { %p2163_p4 = pnand %p2162_p3, %p2156_p0 }
   0xa   :  { %2166 = shalt.err (!%p2163_p4)
}
   0xb   :  { %41 = dma.hbm_to_vmem [thread:$0]  %s2634_s4, 32, %s39_s25, [#allocation5]  }
   0xc   :  { %s2175_s8 = scalar_lea.vmem %s26_s27, 8192  ;;  %p2180_p6 = scmp.lt.s32.totalorder %s26_s27, %s26_s27 }
   0xd   :  { %p2176_p5 = scmp.ne.s32.totalorder %s26_s27, %s2175_s8  ;;  %p2181_p7 = scmp.lt.s32.totalorder %s2175_s8, %s2175_s8 }
   0xf   :  { %p2182_p8 = por %p2181_p7, %p2180_p6 }
  0x11   :  { %p2183_p9 = pnand %p2182_p8, %p2176_p5 }
  0x13   :  { %2186 = shalt.err (!%p2183_p9)
}
  0x14   :  { %s2213_s9 = smov 128   ;;  %s2214_s10 = smov 8  }
  0x15   :  { %31 = dma.hbm_to_vmem [thread:$0]  %s2633_s3, 8192, %s26_s27, [#allocation3], %s2213_s9, %s2213_s9, %s2214_s10  }
  0x16   :  { %s2215_s13 = smov [#allocation6]  }
  0x17   :  { %s47_s14 = sshll.u32 %s2215_s13, 4  ;;  %s48_s14 = int_to_ptr.vmem [resolvable:$true] %s47_s14 }
  0x18   :  { %s2195_s15 = scalar_lea.vmem %s48_s14, 2048  ;;  %p2200_p11 = scmp.lt.s32.totalorder %s48_s14, %s48_s14 }
  0x19   :  { %p2196_p10 = scmp.ne.s32.totalorder %s48_s14, %s2195_s15  ;;  %p2201_p12 = scmp.lt.s32.totalorder %s2195_s15, %s2195_s15 }
  0x1b   :  { %p2202_p13 = por %p2201_p12, %p2200_p11 }
  0x1d   :  { %p2203_p0 = pnand %p2202_p13, %p2196_p10 }
  0x1f   :  { %2206 = shalt.err (!%p2203_p0)
}
  0x20   :  { %s2216_s4 = smov 64   ;;  %s2217_s16 = smov 4  }
  0x21   :  { %53 = dma.hbm_to_vmem [thread:$0]  %s2635_s5, 2048, %s48_s14, [#allocation5], %s2216_s4, %s2216_s4, %s2217_s16  }
  0x22   :  { %2207 = dma.done.wait [#allocation3], 8192  }
  0x23   :  { %2208 = vsyncadd [#allocation3], 4294959104 }
  0x24   :  { %2209 = dma.done.wait [#allocation5], 2080  }
  0x25   :  { %2210 = vsyncadd [#allocation5], 4294965216  ;;  %v2218_v0 = vmov 0   ;;  %v1883_v1 = vld [vmem:[%s2631_s1 + $0xe4] ss:$16 sps:$4 sm:$0xff]  }
  0x26   :  { %789 = vmatprep.mubr.bf16.mxu1 %v2218_v0  ;;  %v1885_v2 = vld [vmem:[%s2631_s1 + $0x2e4] ss:$16 sps:$4 sm:$0xff]   ;;  %704 = vmatprep.subr.bf16.mxu0 %v1883_v1  ;;  %v1887_v3 = vld [vmem:[%s2631_s1 + $0xe0] ss:$16 sps:$4 sm:$0xff]   ;;  %v1936_v34 = vld [vmem:[%s2631_s1 + $0xec] ss:$16 sps:$4 sm:$0xff]  }
  0x27   :  { %v1888_v4 = vld [vmem:[%s2631_s1 + $0x2e0] ss:$16 sps:$4 sm:$0xff]   ;;  %757 = vmatprep.subr.bf16.mxu1 %v1885_v2  ;;  %v1889_v5 = vld [vmem:[%s2631_s1 + $0xc4] ss:$16 sps:$4 sm:$0xff]   ;;  %705 = vmatpush1.bf16.msra.mxu0 %v1887_v3  ;;  %v1934_v36 = vld [vmem:[%s2631_s1 + $0xe8] ss:$16 sps:$4 sm:$0xff]  }
  0x28   :  { %758 = vmatpush1.bf16.msra.mxu1 %v1888_v4  ;;  %v1891_v6 = vld [vmem:[%s2631_s1 + $0x2c4] ss:$16 sps:$4 sm:$0xff]   ;;  %v1893_v7 = vld [vmem:[%s2631_s1 + $0xc0] ss:$16 sps:$4 sm:$0xff]   ;;  %706 = vmatprep.subr.bf16.mxu0 %v1889_v5  ;;  %v1942_v39 = vld [vmem:[%s2631_s1 + $0xcc] ss:$16 sps:$4 sm:$0xff]  }
  0x29   :  { %v1894_v8 = vld [vmem:[%s2631_s1 + $0x2c0] ss:$16 sps:$4 sm:$0xff]   ;;  %759 = vmatprep.subr.bf16.mxu1 %v1891_v6  ;;  %v1895_v9 = vld [vmem:[%s2631_s1 + $0xa4] ss:$16 sps:$4 sm:$0xff]   ;;  %v1940_v40 = vld [vmem:[%s2631_s1 + $0xc8] ss:$16 sps:$4 sm:$0xff]  }
  0x2a   :  { %v1897_v10 = vld [vmem:[%s2631_s1 + $0x2a4] ss:$16 sps:$4 sm:$0xff]   ;;  %v1899_v11 = vld [vmem:[%s2631_s1 + $0xa0] ss:$16 sps:$4 sm:$0xff]   ;;  %v1948_v43 = vld [vmem:[%s2631_s1 + $0xac] ss:$16 sps:$4 sm:$0xff]  }
  0x2b   :  { %v1900_v12 = vld [vmem:[%s2631_s1 + $0x2a0] ss:$16 sps:$4 sm:$0xff]   ;;  %707 = vmatpush1.bf16.msra.mxu0 %v1893_v7  ;;  %v1901_v13 = vld [vmem:[%s2631_s1 + $0x84] ss:$16 sps:$4 sm:$0xff]   ;;  %v1946_v44 = vld [vmem:[%s2631_s1 + $0xa8] ss:$16 sps:$4 sm:$0xff]  }
  0x2c   :  { %760 = vmatpush1.bf16.msra.mxu1 %v1894_v8  ;;  %708 = vmatprep.subr.bf16.mxu0 %v1895_v9  ;;  %v1903_v14 = vld [vmem:[%s2631_s1 + $0x284] ss:$16 sps:$4 sm:$0xff]   ;;  %v1905_v15 = vld [vmem:[%s2631_s1 + $0x80] ss:$16 sps:$4 sm:$0xff]   ;;  %v1954_v47 = vld [vmem:[%s2631_s1 + $0x8c] ss:$16 sps:$4 sm:$0xff]  }
  0x2d   :  { %761 = vmatprep.subr.bf16.mxu1 %v1897_v10  ;;  %v1906_v16 = vld [vmem:[%s2631_s1 + $0x280] ss:$16 sps:$4 sm:$0xff]   ;;  %v1907_v17 = vld [vmem:[%s2631_s1 + $0x64] ss:$16 sps:$4 sm:$0xff]   ;;  %v1952_v48 = vld [vmem:[%s2631_s1 + $0x88] ss:$16 sps:$4 sm:$0xff]  }
  0x2e   :  { %v1909_v18 = vld [vmem:[%s2631_s1 + $0x264] ss:$16 sps:$4 sm:$0xff]   ;;  %v1911_v19 = vld [vmem:[%s2631_s1 + $0x60] ss:$16 sps:$4 sm:$0xff]   ;;  %v1960_v52 = vld [vmem:[%s2631_s1 + $0x6c] ss:$16 sps:$4 sm:$0xff]  }
  0x2f   :  { %709 = vmatpush1.bf16.msra.mxu0 %v1899_v11  ;;  %v1912_v20 = vld [vmem:[%s2631_s1 + $0x260] ss:$16 sps:$4 sm:$0xff]   ;;  %v1913_v21 = vld [vmem:[%s2631_s1 + $0x44] ss:$16 sps:$4 sm:$0xff]   ;;  %v1958_v53 = vld [vmem:[%s2631_s1 + $0x68] ss:$16 sps:$4 sm:$0xff]  }
  0x30   :  { %762 = vmatpush1.bf16.msra.mxu1 %v1900_v12  ;;  %710 = vmatprep.subr.bf16.mxu0 %v1901_v13  ;;  %v1915_v22 = vld [vmem:[%s2631_s1 + $0x244] ss:$16 sps:$4 sm:$0xff]   ;;  %v1917_v23 = vld [vmem:[%s2631_s1 + $0x40] ss:$16 sps:$4 sm:$0xff]   ;;  %v1966_v56 = vld [vmem:[%s2631_s1 + $0x4c] ss:$16 sps:$4 sm:$0xff]  }
  0x31   :  { %763 = vmatprep.subr.bf16.mxu1 %v1903_v14  ;;  %v1918_v24 = vld [vmem:[%s2631_s1 + $0x240] ss:$16 sps:$4 sm:$0xff]   ;;  %v1919_v25 = vld [vmem:[%s2631_s1 + $0x24] ss:$16 sps:$4 sm:$0xff]   ;;  %v1964_v57 = vld [vmem:[%s2631_s1 + $0x48] ss:$16 sps:$4 sm:$0xff]  }
  0x32   :  { %v1921_v26 = vld [vmem:[%s2631_s1 + $0x224] ss:$16 sps:$4 sm:$0xff]   ;;  %v1923_v27 = vld [vmem:[%s2631_s1 + $0x20] ss:$16 sps:$4 sm:$0xff]   ;;  %v1972_v60 = vld [vmem:[%s2631_s1 + $0x2c] ss:$16 sps:$4 sm:$0xff]  }
  0x33   :  { %711 = vmatpush1.bf16.msra.mxu0 %v1905_v15  ;;  %v1924_v28 = vld [vmem:[%s2631_s1 + $0x220] ss:$16 sps:$4 sm:$0xff]   ;;  %v1925_v29 = vld [vmem:[%s2631_s1 + $0x4] ss:$16 sps:$4 sm:$0xff]   ;;  %v1970_v62 = vld [vmem:[%s2631_s1 + $0x28] ss:$16 sps:$4 sm:$0xff]  }
  0x34   :  { %764 = vmatpush1.bf16.msra.mxu1 %v1906_v16  ;;  %712 = vmatprep.subr.bf16.mxu0 %v1907_v17  ;;  %v1927_v30 = vld [vmem:[%s2631_s1 + $0x204] ss:$16 sps:$4 sm:$0xff]   ;;  %v1929_v31 = vld [vmem:[%s2631_s1] ss:$16 sps:$4 sm:$0xff]   ;;  %v1978_v2 = vld [vmem:[%s2631_s1 + $0xc] ss:$16 sps:$4 sm:$0xff]  }
  0x35   :  { %765 = vmatprep.subr.bf16.mxu1 %v1909_v18  ;;  %v1930_v32 = vld [vmem:[%s2631_s1 + $0x200] ss:$16 sps:$4 sm:$0xff]   ;;  %v1931_v33 = vld [vmem:[%s2631_s1 + $0x1e4] ss:$16 sps:$4 sm:$0xff]   ;;  %v1976_v3 = vld [vmem:[%s2631_s1 + $0x8] ss:$16 sps:$4 sm:$0xff]  }
  0x36   :  { %v2374_v35 = vld [vmem:[%s2630_s0 + $0x8] ss:$12 sps:$4 sm:$0xff]   ;;  %v1937_v37 = vld [vmem:[%s2631_s1 + $0x1e0] ss:$16 sps:$4 sm:$0xff]   ;;  %v1985_v5 = vld [vmem:[%s2631_s1 + $0x1ec] ss:$16 sps:$4 sm:$0xff]  }
  0x37   :  { %713 = vmatpush1.bf16.msra.mxu0 %v1911_v19  ;;  %v1938_v38 = vld [vmem:[%s2631_s1 + $0x1c4] ss:$16 sps:$4 sm:$0xff]   ;;  %v1943_v41 = vld [vmem:[%s2631_s1 + $0x1c0] ss:$16 sps:$4 sm:$0xff]   ;;  %v1988_v6 = vld [vmem:[%s2631_s1 + $0x2ec] ss:$16 sps:$4 sm:$0xff]  }
  0x38   :  { %766 = vmatpush1.bf16.msra.mxu1 %v1912_v20  ;;  %714 = vmatprep.subr.bf16.mxu0 %v1913_v21  ;;  %v1944_v42 = vld [vmem:[%s2631_s1 + $0x1a4] ss:$16 sps:$4 sm:$0xff]   ;;  %v1949_v45 = vld [vmem:[%s2631_s1 + $0x1a0] ss:$16 sps:$4 sm:$0xff]   ;;  %v1983_v8 = vld [vmem:[%s2631_s1 + $0x1e8] ss:$16 sps:$4 sm:$0xff]  }
  0x39   :  { %767 = vmatprep.subr.bf16.mxu1 %v1915_v22  ;;  %v1950_v46 = vld [vmem:[%s2631_s1 + $0x184] ss:$16 sps:$4 sm:$0xff]   ;;  %v1955_v49 = vld [vmem:[%s2631_s1 + $0x180] ss:$16 sps:$4 sm:$0xff]   ;;  %v1986_v9 = vld [vmem:[%s2631_s1 + $0x2e8] ss:$16 sps:$4 sm:$0xff]  }
  0x3a   :  { %v1956_v50 = vld [vmem:[%s2631_s1 + $0x164] ss:$16 sps:$4 sm:$0xff]   ;;  %v1961_v54 = vld [vmem:[%s2631_s1 + $0x160] ss:$16 sps:$4 sm:$0xff]   ;;  %v1991_v10 = vld [vmem:[%s2631_s1 + $0x1cc] ss:$16 sps:$4 sm:$0xff]  }
  0x3b   :  { %715 = vmatpush1.bf16.msra.mxu0 %v1917_v23  ;;  %v1982_v51 = vld [vmem:[%s2630_s0 + $0x4] ss:$12 sps:$4 sm:$0xff]   ;;  %v2456_v61 = vld [vmem:[%s2630_s0 + $0x20] ss:$12 sps:$4 sm:$0xff]   ;;  %v2503_v12 = vld [vmem:[%s2630_s0 + $0x1c] ss:$12 sps:$4 sm:$0xff]  }
  0x3c   :  { %768 = vmatpush1.bf16.msra.mxu1 %v1918_v24  ;;  %716 = vmatprep.subr.bf16.mxu0 %v1919_v25  ;;  %v1962_v55 = vld [vmem:[%s2631_s1 + $0x144] ss:$16 sps:$4 sm:$0xff]   ;;  %v1967_v58 = vld [vmem:[%s2631_s1 + $0x140] ss:$16 sps:$4 sm:$0xff]   ;;  %v1994_v11 = vld [vmem:[%s2631_s1 + $0x2cc] ss:$16 sps:$4 sm:$0xff]  }
  0x3d   :  { %769 = vmatprep.subr.bf16.mxu1 %v1921_v26  ;;  %736 = vmatprep.mubr.bf16.mxu0 %v1982_v51  ;;  %v1968_v59 = vld [vmem:[%s2631_s1 + $0x124] ss:$16 sps:$4 sm:$0xff]   ;;  %v1973_v63 = vld [vmem:[%s2631_s1 + $0x120] ss:$16 sps:$4 sm:$0xff]   ;;  %v1989_v13 = vld [vmem:[%s2631_s1 + $0x1c8] ss:$16 sps:$4 sm:$0xff]  }
  0x3e   :  { %v1974_v1 = vld [vmem:[%s2631_s1 + $0x104] ss:$16 sps:$4 sm:$0xff]   ;;  %v1979_v4 = vld [vmem:[%s2631_s1 + $0x100] ss:$16 sps:$4 sm:$0xff]   ;;  %v1992_v14 = vld [vmem:[%s2631_s1 + $0x2c8] ss:$16 sps:$4 sm:$0xff]  }
  0x3f   :  { %717 = vmatpush1.bf16.msra.mxu0 %v1923_v27  ;;  %v2486_v7 = vld [vmem:[%s2630_s0] ss:$12 sps:$4 sm:$0xff]   ;;  %v2522_v17 = vld [vmem:[%s2630_s0 + $0x18] ss:$12 sps:$4 sm:$0xff]  }
  0x40   :  { %770 = vmatpush1.bf16.msra.mxu1 %v1924_v28  ;;  %718 = vmatprep.subr.bf16.mxu0 %v1925_v29  ;;  %v1999_v15 = vld [vmem:[%s2631_s1 + $0x1ac] ss:$16 sps:$4 sm:$0xff]   ;;  %v1997_v18 = vld [vmem:[%s2631_s1 + $0x1a8] ss:$16 sps:$4 sm:$0xff]  }
  0x41   :  { %771 = vmatprep.subr.bf16.mxu1 %v1927_v30  ;;  %v2002_v16 = vld [vmem:[%s2631_s1 + $0x2ac] ss:$16 sps:$4 sm:$0xff]   ;;  %v2000_v19 = vld [vmem:[%s2631_s1 + $0x2a8] ss:$16 sps:$4 sm:$0xff]  }
  0x42   :  { %v2007_v20 = vld [vmem:[%s2631_s1 + $0x18c] ss:$16 sps:$4 sm:$0xff]   ;;  %v2005_v22 = vld [vmem:[%s2631_s1 + $0x188] ss:$16 sps:$4 sm:$0xff]  }
  0x43   :  { %719 = vmatpush1.bf16.msra.mxu0 %v1929_v31  ;;  %v2010_v21 = vld [vmem:[%s2631_s1 + $0x28c] ss:$16 sps:$4 sm:$0xff]   ;;  %v2008_v23 = vld [vmem:[%s2631_s1 + $0x288] ss:$16 sps:$4 sm:$0xff]  }
  0x44   :  { %772 = vmatpush1.bf16.msra.mxu1 %v1930_v32  ;;  %720 = vmatprep.subr.bf16.mxu0 %v1931_v33  ;;  %v2013_v24 = vld [vmem:[%s2631_s1 + $0x16c] ss:$16 sps:$4 sm:$0xff]   ;;  %v2011_v26 = vld [vmem:[%s2631_s1 + $0x168] ss:$16 sps:$4 sm:$0xff]  }
  0x45   :  { %810 = vmatprep.subr.bf16.mxu1 %v1936_v34  ;;  %v2016_v25 = vld [vmem:[%s2631_s1 + $0x26c] ss:$16 sps:$4 sm:$0xff]   ;;  %v2014_v27 = vld [vmem:[%s2631_s1 + $0x268] ss:$16 sps:$4 sm:$0xff]  }
  0x46   :  { %v2019_v28 = vld [vmem:[%s2631_s1 + $0x14c] ss:$16 sps:$4 sm:$0xff]   ;;  %v2017_v30 = vld [vmem:[%s2631_s1 + $0x148] ss:$16 sps:$4 sm:$0xff]  }
  0x47   :  { %790 = vmatmul.mubr.bf16.vlgmr.msra.gmra.mxu1 %v2374_v35  ;;  %721 = vmatpush2.bf16.msra.mxu0 %v1937_v37  ;;  %v2022_v29 = vld [vmem:[%s2631_s1 + $0x24c] ss:$16 sps:$4 sm:$0xff]   ;;  %v2020_v31 = vld [vmem:[%s2631_s1 + $0x248] ss:$16 sps:$4 sm:$0xff]  }
  0x48   :  { %811 = vmatpush1.bf16.msra.mxu1 %v1934_v36  ;;  %722 = vmatprep.subr.bf16.mxu0 %v1938_v38  ;;  %v2025_v32 = vld [vmem:[%s2631_s1 + $0x12c] ss:$16 sps:$4 sm:$0xff]   ;;  %v2023_v34 = vld [vmem:[%s2631_s1 + $0x128] ss:$16 sps:$4 sm:$0xff]  }
  0x49   :  { %812 = vmatprep.subr.bf16.mxu1 %v1942_v39  ;;  %799 = vmatprep.mubr.bf16.mxu1 %v2218_v0  ;;  %v2028_v33 = vld [vmem:[%s2631_s1 + $0x22c] ss:$16 sps:$4 sm:$0xff]   ;;  %v2026_v36 = vld [vmem:[%s2631_s1 + $0x228] ss:$16 sps:$4 sm:$0xff]  }
  0x4a   :  { %v2031_v37 = vld [vmem:[%s2631_s1 + $0x10c] ss:$16 sps:$4 sm:$0xff]   ;;  %v2029_v39 = vld [vmem:[%s2631_s1 + $0x108] ss:$16 sps:$4 sm:$0xff]  }
  0x4b   :  { %723 = vmatpush2.bf16.msra.mxu0 %v1943_v41  ;;  %v2034_v38 = vld [vmem:[%s2631_s1 + $0x20c] ss:$16 sps:$4 sm:$0xff]  }
  0x4c   :  { %813 = vmatpush1.bf16.msra.mxu1 %v1940_v40  ;;  %724 = vmatprep.subr.bf16.mxu0 %v1944_v42  ;;  %v2032_v40 = vld [vmem:[%s2631_s1 + $0x208] ss:$16 sps:$4 sm:$0xff]   ;;  %v2037_v41 = vld [vmem:[#allocation2 + $0x74] ss:$8 sps:$4 sm:$0xff]  }
  0x4d   :  { %814 = vmatprep.subr.bf16.mxu1 %v1948_v43  ;;  %v2035_v42 = vld [vmem:[#allocation2 + $0x70] ss:$8 sps:$4 sm:$0xff]   ;;  %v2040_v43 = vld [vmem:[#allocation2 + $0x64] ss:$8 sps:$4 sm:$0xff]  }
  0x4f   :  { %725 = vmatpush2.bf16.msra.mxu0 %v1949_v45  ;;  %800 = vmatmul.mubr.bf16.gmra.mxu1 %v2456_v61  ;;  %v2043_v45 = vld [vmem:[#allocation2 + $0x54] ss:$8 sps:$4 sm:$0xff]  }
  0x50   :  { %815 = vmatpush1.bf16.msra.mxu1 %v1946_v44  ;;  %726 = vmatprep.subr.bf16.mxu0 %v1950_v46  ;;  %v2038_v44 = vld [vmem:[#allocation2 + $0x60] ss:$8 sps:$4 sm:$0xff]   ;;  %v2041_v46 = vld [vmem:[#allocation2 + $0x50] ss:$8 sps:$4 sm:$0xff]  }
  0x51   :  { %816 = vmatprep.subr.bf16.mxu1 %v1954_v47  ;;  %842 = vmatprep.mubr.bf16.mxu1 %v1982_v51  ;;  %v2046_v47 = vld [vmem:[#allocation2 + $0x44] ss:$8 sps:$4 sm:$0xff]   ;;  %v2068_v51 = vld [vmem:[#allocation2 + $0x160] ss:$8 sps:$4 sm:$0xff]  }
  0x53   :  { %727 = vmatpush2.bf16.msra.mxu0 %v1955_v49  ;;  %v2064_v49 = vld [vmem:[#allocation2 + $0x174] ss:$8 sps:$4 sm:$0xff]  }
  0x54   :  { %817 = vmatpush1.bf16.msra.mxu1 %v1952_v48  ;;  %728 = vmatprep.subr.bf16.mxu0 %v1956_v50  ;;  %v2062_v48 = vld [vmem:[#allocation2 + $0x170] ss:$8 sps:$4 sm:$0xff]   ;;  %v2070_v50 = vld [vmem:[#allocation2 + $0x164] ss:$8 sps:$4 sm:$0xff]  }
  0x55   :  { %818 = vmatprep.subr.bf16.mxu1 %v1960_v52  ;;  %v2076_v52 = vld [vmem:[#allocation2 + $0x154] ss:$8 sps:$4 sm:$0xff]  }
  0x57   :  { %729 = vmatpush2.bf16.msra.mxu0 %v1961_v54  ;;  %v2052_v54 = vld [vmem:[#allocation2 + $0x24] ss:$8 sps:$4 sm:$0xff]  }
  0x58   :  { %819 = vmatpush1.bf16.msra.mxu1 %v1958_v53  ;;  %730 = vmatprep.subr.bf16.mxu0 %v1962_v55  ;;  %v2047_v53 = vld [vmem:[#allocation2 + $0x30] ss:$8 sps:$4 sm:$0xff]  }
  0x59   :  { %820 = vmatprep.subr.bf16.mxu1 %v1966_v56  ;;  %v2074_v55 = vld [vmem:[#allocation2 + $0x150] ss:$8 sps:$4 sm:$0xff]   ;;  %v2082_v56 = vld [vmem:[#allocation2 + $0x144] ss:$8 sps:$4 sm:$0xff]  }
  0x5b   :  { %731 = vmatpush2.bf16.msra.mxu0 %v1967_v58  ;;  %v2055_v58 = vld [vmem:[#allocation2 + $0x14] ss:$8 sps:$4 sm:$0xff]  }
  0x5c   :  { %821 = vmatpush1.bf16.msra.mxu1 %v1964_v57  ;;  %732 = vmatprep.subr.bf16.mxu0 %v1968_v59  ;;  %v2050_v57 = vld [vmem:[#allocation2 + $0x20] ss:$8 sps:$4 sm:$0xff]  }
  0x5d   :  { %822 = vmatprep.subr.bf16.mxu1 %v1972_v60  ;;  %v2080_v59 = vld [vmem:[#allocation2 + $0x140] ss:$8 sps:$4 sm:$0xff]   ;;  %v2053_v60 = vld [vmem:[#allocation2 + $0x10] ss:$8 sps:$4 sm:$0xff]  }
  0x5f   :  { %733 = vmatpush2.bf16.msra.mxu0 %v1973_v63  ;;  %v2061_v63 = vld [vmem:[#allocation2 + $0xf4] ss:$8 sps:$4 sm:$0xff]  }
  0x60   :  { %823 = vmatpush1.bf16.msra.mxu1 %v1970_v62  ;;  %734 = vmatprep.subr.bf16.mxu0 %v1974_v1  ;;  %v2056_v62 = vld [vmem:[#allocation2] ss:$8 sps:$4 sm:$0xff]   ;;  %v2059_v1 = vld [vmem:[#allocation2 + $0xf0] ss:$8 sps:$4 sm:$0xff]  }
  0x61   :  { %824 = vmatprep.subr.bf16.mxu1 %v1978_v2  ;;  %v2088_v2 = vld [vmem:[#allocation2 + $0x134] ss:$8 sps:$4 sm:$0xff]  }
  0x63   :  { %735 = vmatpush2.bf16.msra.mxu0 %v1979_v4  ;;  %v2086_v4 = vld [vmem:[#allocation2 + $0x130] ss:$8 sps:$4 sm:$0xff]  }
  0x64   :  { %825 = vmatpush1.bf16.msra.mxu1 %v1976_v3  ;;  %863 = vmatprep.subr.bf16.mxu0 %v1988_v6  ;;  %v2067_v3 = vld [vmem:[#allocation2 + $0xe4] ss:$8 sps:$4 sm:$0xff]  }
  0x65   :  { %826 = vmatprep.subr.bf16.mxu1 %v1985_v5  ;;  %v2065_v5 = vld [vmem:[#allocation2 + $0xe0] ss:$8 sps:$4 sm:$0xff]   ;;  %v2094_v6 = vld [vmem:[#allocation2 + $0x124] ss:$8 sps:$4 sm:$0xff]  }
  0x66   :  { %737 = vmatmul.mubr.bf16.vlgmr.msra.gmra.mxu0 %v2486_v7 }
  0x67   :  { %864 = vmatpush1.bf16.msra.mxu0 %v1986_v9  ;;  %746 = vmatprep.mubr.bf16.mxu0 %v2503_v12  ;;  %v2071_v9 = vld [vmem:[#allocation2 + $0xd0] ss:$8 sps:$4 sm:$0xff]  }
  0x68   :  { %827 = vmatpush2.bf16.msra.mxu1 %v1983_v8  ;;  %865 = vmatprep.subr.bf16.mxu0 %v1994_v11  ;;  %v2092_v8 = vld [vmem:[#allocation2 + $0x120] ss:$8 sps:$4 sm:$0xff]   ;;  %v2079_v11 = vld [vmem:[#allocation2 + $0xc4] ss:$8 sps:$4 sm:$0xff]  }
  0x69   :  { %828 = vmatprep.subr.bf16.mxu1 %v1991_v10  ;;  %v2100_v10 = vld [vmem:[#allocation2 + $0x114] ss:$8 sps:$4 sm:$0xff]  }
  0x6b   :  { %866 = vmatpush1.bf16.msra.mxu0 %v1992_v14  ;;  %v2106_v14 = vld [vmem:[#allocation2 + $0x104] ss:$8 sps:$4 sm:$0xff]  }
  0x6c   :  { %829 = vmatpush2.bf16.msra.mxu1 %v1989_v13  ;;  %867 = vmatprep.subr.bf16.mxu0 %v2002_v16  ;;  %v2077_v13 = vld [vmem:[#allocation2 + $0xc0] ss:$8 sps:$4 sm:$0xff]  }
  0x6d   :  { %830 = vmatprep.subr.bf16.mxu1 %v1999_v15  ;;  %v2085_v15 = vld [vmem:[#allocation2 + $0xb4] ss:$8 sps:$4 sm:$0xff]   ;;  %v2104_v16 = vld [vmem:[#allocation2 + $0x100] ss:$8 sps:$4 sm:$0xff]  }
  0x6e   :  { %747 = vmatmul.mubr.bf16.gmra.mxu0 %v2522_v17 }
  0x6f   :  { %868 = vmatpush1.bf16.msra.mxu0 %v2000_v19  ;;  %895 = vmatprep.mubr.bf16.mxu0 %v2218_v0  ;;  %v2091_v19 = vld [vmem:[#allocation2 + $0xa4] ss:$8 sps:$4 sm:$0xff]  }
  0x70   :  { %831 = vmatpush2.bf16.msra.mxu1 %v1997_v18  ;;  %869 = vmatprep.subr.bf16.mxu0 %v2010_v21  ;;  %v2109_v18 = vld [vmem:[#allocation2 + $0x1f4] ss:$8 sps:$4 sm:$0xff]   ;;  %v2089_v21 = vld [vmem:[#allocation2 + $0xa0] ss:$8 sps:$4 sm:$0xff]  }
  0x71   :  { %832 = vmatprep.subr.bf16.mxu1 %v2007_v20  ;;  %v2107_v20 = vld [vmem:[#allocation2 + $0x1f0] ss:$8 sps:$4 sm:$0xff]  }
  0x73   :  { %870 = vmatpush1.bf16.msra.mxu0 %v2008_v23  ;;  %v2097_v23 = vld [vmem:[#allocation2 + $0x94] ss:$8 sps:$4 sm:$0xff]  }
  0x74   :  { %833 = vmatpush2.bf16.msra.mxu1 %v2005_v22  ;;  %871 = vmatprep.subr.bf16.mxu0 %v2016_v25  ;;  %v2112_v22 = vld [vmem:[#allocation2 + $0x1e4] ss:$8 sps:$4 sm:$0xff]   ;;  %v2095_v25 = vld [vmem:[#allocation2 + $0x90] ss:$8 sps:$4 sm:$0xff]  }
  0x75   :  { %834 = vmatprep.subr.bf16.mxu1 %v2013_v24  ;;  %v2110_v24 = vld [vmem:[#allocation2 + $0x1e0] ss:$8 sps:$4 sm:$0xff]  }
  0x77   :  { %872 = vmatpush1.bf16.msra.mxu0 %v2014_v27  ;;  %v2103_v27 = vld [vmem:[#allocation2 + $0x84] ss:$8 sps:$4 sm:$0xff]  }
  0x78   :  { %835 = vmatpush2.bf16.msra.mxu1 %v2011_v26  ;;  %873 = vmatprep.subr.bf16.mxu0 %v2022_v29  ;;  %v2115_v26 = vld [vmem:[#allocation2 + $0x1d4] ss:$8 sps:$4 sm:$0xff]   ;;  %v2118_v29 = vld [vmem:[#allocation2 + $0x1c4] ss:$8 sps:$4 sm:$0xff]  }
  0x79   :  { %836 = vmatprep.subr.bf16.mxu1 %v2019_v28  ;;  %v2113_v28 = vld [vmem:[#allocation2 + $0x1d0] ss:$8 sps:$4 sm:$0xff]  }
  0x7b   :  { %874 = vmatpush1.bf16.msra.mxu0 %v2020_v31  ;;  %v2101_v31 = vld [vmem:[#allocation2 + $0x80] ss:$8 sps:$4 sm:$0xff]  }
  0x7c   :  { %837 = vmatpush2.bf16.msra.mxu1 %v2017_v30  ;;  %875 = vmatprep.subr.bf16.mxu0 %v2028_v33  ;;  %v2116_v30 = vld [vmem:[#allocation2 + $0x1c0] ss:$8 sps:$4 sm:$0xff]   ;;  %v2119_v33 = vld [vmem:[#allocation2 + $0x1b0] ss:$8 sps:$4 sm:$0xff]  }
  0x7d   :  { %838 = vmatprep.subr.bf16.mxu1 %v2025_v32  ;;  %v2121_v32 = vld [vmem:[#allocation2 + $0x1b4] ss:$8 sps:$4 sm:$0xff]  }
  0x7f   :  { %876 = vmatpush1.bf16.msra.mxu0 %v2026_v36  ;;  %v2122_v36 = vld [vmem:[#allocation2 + $0x1a0] ss:$8 sps:$4 sm:$0xff]  }
  0x80   :  { %839 = vmatpush2.bf16.msra.mxu1 %v2023_v34  ;;  %877 = vmatprep.subr.bf16.mxu0 %v2034_v38  ;;  %v2124_v34 = vld [vmem:[#allocation2 + $0x1a4] ss:$8 sps:$4 sm:$0xff]   ;;  %v2125_v38 = vld [vmem:[#allocation2 + $0x190] ss:$8 sps:$4 sm:$0xff]  }
  0x81   :  { %840 = vmatprep.subr.bf16.mxu1 %v2031_v37  ;;  %v2127_v37 = vld [vmem:[#allocation2 + $0x194] ss:$8 sps:$4 sm:$0xff]  }
  0x83   :  { %878 = vmatpush1.bf16.msra.mxu0 %v2032_v40  ;;  %v2128_v40 = vld [vmem:[#allocation2 + $0x180] ss:$8 sps:$4 sm:$0xff]  }
  0x84   :  { %841 = vmatpush2.bf16.msra.mxu1 %v2029_v39  ;;  %1336 = vmatprep.subr.bf16.mxu0 %v2037_v41  ;;  %v2130_v39 = vld [vmem:[#allocation2 + $0x184] ss:$8 sps:$4 sm:$0xff]  }
  0x85   :  { %1389 = vmatprep.subr.bf16.mxu1 %v2064_v49 }
  0x86   :  { %896 = vmatmul.mubr.bf16.vlgmr.msra.gmra.mxu0 %v2374_v35  ;;  %v2044_v35 = vld [vmem:[#allocation2 + $0x40] ss:$8 sps:$4 sm:$0xff]  }
  0x87   :  { %843 = vmatmul.mubr.bf16.vlgmr.msra.gmra.mxu1 %v2486_v7  ;;  %905 = vmatprep.mubr.bf16.mxu0 %v2218_v0  ;;  %v2049_v0 = vld [vmem:[#allocation2 + $0x34] ss:$8 sps:$4 sm:$0xff]  }
  0x88   :  { %852 = vmatprep.mubr.bf16.mxu1 %v2503_v12  ;;  %1337 = vmatpush1.bf16.msra.mxu0 %v2035_v42  ;;  %v2073_v7 = vld [vmem:[#allocation2 + $0xd4] ss:$8 sps:$4 sm:$0xff]   ;;  %v2098_v12 = vld [vmem:[#allocation2 + $0x110] ss:$8 sps:$4 sm:$0xff]   ;;  %v172_v42 = vlaneseq }
  0x89   :  { %1338 = vmatprep.subr.bf16.mxu0 %v2040_v43  ;;  %1390 = vmatpush1.bf16.msra.mxu1 %v2062_v48  ;;  %v170_v48 = vld [vmem:[%s2632_s2] sm:$0xf] }
  0x8a   :  { %1391 = vmatprep.subr.bf16.mxu1 %v2070_v50 }
  0x8c   :  { %1339 = vmatpush1.bf16.msra.mxu0 %v2038_v44  ;;  %v2598_v44 = vshrl.u32 %v172_v42, 7 }
  0x8d   :  { %1340 = vmatprep.subr.bf16.mxu0 %v2043_v45  ;;  %1392 = vmatpush1.bf16.msra.mxu1 %v2068_v51 }
  0x8e   :  { %906 = vmatmul.mubr.bf16.gmra.mxu0 %v2456_v61  ;;  %1393 = vmatprep.subr.bf16.mxu1 %v2076_v52  ;;  %v2058_v61 = vld [vmem:[#allocation2 + $0x4] ss:$8 sps:$4 sm:$0xff]   ;;  %v178_v45 = vsub.s32 1, %v2598_v44 }
  0x8f   :  { %853 = vmatmul.mubr.bf16.gmra.mxu1 %v2522_v17  ;;  %v2083_v17 = vld [vmem:[#allocation2 + $0xb0] ss:$8 sps:$4 sm:$0xff]  }
  0x90   :  { %1341 = vmatpush1.bf16.msra.mxu0 %v2041_v46  ;;  %v179_v49 = vrot.slane %v170_v48, %v178_v45 }
  0x91   :  { %1342 = vmatprep.subr.bf16.mxu0 %v2046_v47  ;;  %1394 = vmatpush1.bf16.msra.mxu1 %v2074_v55  ;;  %v174_v47 = vsub.s32 0, %v2598_v44 }
  0x92   :  { %1395 = vmatprep.subr.bf16.mxu1 %v2082_v56 }
  0x94   :  { %1343 = vmatpush1.bf16.msra.mxu0 %v2044_v35  ;;  %v175_v35 = vrot.slane %v170_v48, %v174_v47 }
  0x95   :  { %1344 = vmatprep.subr.bf16.mxu0 %v2049_v0  ;;  %1396 = vmatpush1.bf16.msra.mxu1 %v2080_v59 }
  0x96   :  { %1397 = vmatprep.subr.bf16.mxu1 %v2088_v2 }
  0x98   :  { %1345 = vmatpush1.bf16.msra.mxu0 %v2047_v53 }
  0x99   :  { %1346 = vmatprep.subr.bf16.mxu0 %v2052_v54  ;;  %1398 = vmatpush1.bf16.msra.mxu1 %v2086_v4 }
  0x9a   :  { %1399 = vmatprep.subr.bf16.mxu1 %v2094_v6 }
  0x9c   :  { %1347 = vmatpush1.bf16.msra.mxu0 %v2050_v57 }
  0x9d   :  { %1348 = vmatprep.subr.bf16.mxu0 %v2055_v58  ;;  %1400 = vmatpush1.bf16.msra.mxu1 %v2092_v8 }
  0x9e   :  { %1401 = vmatprep.subr.bf16.mxu1 %v2100_v10 }
  0xa0   :  { %1349 = vmatpush1.bf16.msra.mxu0 %v2053_v60 }
  0xa1   :  { %1350 = vmatprep.subr.bf16.mxu0 %v2058_v61  ;;  %1402 = vmatpush1.bf16.msra.mxu1 %v2098_v12 }
  0xa2   :  { %1403 = vmatprep.subr.bf16.mxu1 %v2106_v14 }
  0xa4   :  { %1351 = vmatpush1.bf16.msra.mxu0 %v2056_v62 }
  0xa5   :  { %1352 = vmatprep.subr.bf16.mxu0 %v2061_v63  ;;  %1404 = vmatpush1.bf16.msra.mxu1 %v2104_v16 }
  0xa6   :  { %1405 = vmatprep.subr.bf16.mxu1 %v2109_v18 }
  0xa8   :  { %1353 = vmatpush2.bf16.msra.mxu0 %v2059_v1 }
  0xa9   :  { %1354 = vmatprep.subr.bf16.mxu0 %v2067_v3  ;;  %1406 = vmatpush2.bf16.msra.mxu1 %v2107_v20 }
  0xaa   :  { %1407 = vmatprep.subr.bf16.mxu1 %v2112_v22 }
  0xac   :  { %1355 = vmatpush2.bf16.msra.mxu0 %v2065_v5 }
  0xad   :  { %1356 = vmatprep.subr.bf16.mxu0 %v2073_v7  ;;  %1408 = vmatpush2.bf16.msra.mxu1 %v2110_v24 }
  0xae   :  { %1409 = vmatprep.subr.bf16.mxu1 %v2115_v26 }
  0xb0   :  { %1357 = vmatpush2.bf16.msra.mxu0 %v2071_v9 }
  0xb1   :  { %1358 = vmatprep.subr.bf16.mxu0 %v2079_v11  ;;  %1410 = vmatpush2.bf16.msra.mxu1 %v2113_v28  ;;  %v182_v28 = vsub.s32 2, %v2598_v44 }
  0xb2   :  { %1411 = vmatprep.subr.bf16.mxu1 %v2118_v29 }
  0xb4   :  { %1359 = vmatpush2.bf16.msra.mxu0 %v2077_v13 }
  0xb5   :  { %1360 = vmatprep.subr.bf16.mxu0 %v2085_v15  ;;  %1412 = vmatpush2.bf16.msra.mxu1 %v2116_v30  ;;  %v183_v30 = vrot.slane %v170_v48, %v182_v28  ;;  %v2145_v28 = vld [vmem:[#allocation6 + $0x40] sm:$0xff]  }
  0xb6   :  { %1413 = vmatprep.subr.bf16.mxu1 %v2121_v32 }
  0xb8   :  { %1361 = vmatpush2.bf16.msra.mxu0 %v2083_v17 }
  0xb9   :  { %1362 = vmatprep.subr.bf16.mxu0 %v2091_v19  ;;  %1414 = vmatpush2.bf16.msra.mxu1 %v2119_v33 }
  0xba   :  { %1415 = vmatprep.subr.bf16.mxu1 %v2124_v34 }
  0xbc   :  { %1363 = vmatpush2.bf16.msra.mxu0 %v2089_v21 }
  0xbd   :  { %1364 = vmatprep.subr.bf16.mxu0 %v2097_v23  ;;  %1416 = vmatpush2.bf16.msra.mxu1 %v2122_v36 }
  0xbe   :  { %1417 = vmatprep.subr.bf16.mxu1 %v2127_v37 }
  0xc0   :  { %1365 = vmatpush2.bf16.msra.mxu0 %v2095_v25 }
  0xc1   :  { %1366 = vmatprep.subr.bf16.mxu0 %v2103_v27  ;;  %1418 = vmatpush2.bf16.msra.mxu1 %v2125_v38  ;;  %v186_v27 = vsub.s32 3, %v2598_v44 }
  0xc2   :  { %1419 = vmatprep.subr.bf16.mxu1 %v2130_v39 }
  0xc3   :  { %v187_v29 = vrot.slane %v170_v48, %v186_v27  ;;  %v2144_v27 = vld [vmem:[#allocation6 + $0x8] sm:$0xff]  }
  0xc4   :  { %1367 = vmatpush2.bf16.msra.mxu0 %v2101_v31 }
  0xc5   :  { %1420 = vmatpush2.bf16.msra.mxu1 %v2128_v40 }
 0x107   :  { %v791_v41 = vpop.f32.mrf.mxu1 }
 0x109   :  { %v793_v43 = vpop.f32.mrf.mxu1 }
 0x10b   :  { %v795_v46 = vpop.f32.mrf.mxu1 }
 0x10d   :  { %v797_v50 = vpop.f32.mrf.mxu1 }
 0x10f   :  { %v801_v52 = vpop.f32.mrf.mxu1 }
 0x111   :  { %v803_v58 = vpop.f32.mrf.mxu1 }
 0x113   :  { %v805_v5 = vpop.f32.mrf.mxu1 }
 0x115   :  { %v807_v17 = vpop.f32.mrf.mxu1 }
 0x126   :  { %v738_v0 = vpop.f32.mrf.mxu0 }
 0x127   :  { %v739_v54 = vadd.f32 %v738_v0, %v175_v35 }
 0x128   :  { %v740_v51 = vpop.f32.mrf.mxu0 }
 0x129   :  { %v741_v53 = vadd.f32 %v740_v51, %v179_v49  ;;  %v792_v62 = vadd.f32 %v791_v41, %v739_v54 }
 0x12a   :  { %v742_v55 = vpop.f32.mrf.mxu0 }
 0x12b   :  { %v743_v56 = vadd.f32 %v742_v55, %v175_v35  ;;  %v794_v59 = vadd.f32 %v793_v43, %v741_v53  ;;  %v916_v9 = vmax.f32 %v792_v62, 0.0 }
 0x12c   :  { %v744_v57 = vpop.f32.mrf.mxu0 }
 0x12d   :  { %v796_v60 = vadd.f32 %v795_v46, %v743_v56  ;;  %v745_v61 = vadd.f32 %v744_v57, %v179_v49  ;;  %v917_v6 = vmax.f32 %v794_v59, 0.0 }
 0x12e   :  { %v748_v63 = vpop.f32.mrf.mxu0 }
 0x12f   :  { %v798_v1 = vadd.f32 %v797_v50, %v745_v61  ;;  %v749_v2 = vadd.f32 %v748_v63, %v175_v35  ;;  %v920_v3 = vmax.f32 %v796_v60, 0.0 }
 0x130   :  { %v750_v4 = vpop.f32.mrf.mxu0 }
 0x131   :  { %v921_v7 = vmax.f32 %v798_v1, 0.0  ;;  %v751_v8 = vadd.f32 %v750_v4, %v179_v49  ;;  %v802_v10 = vadd.f32 %v801_v52, %v749_v2  ;;  %v932_v15 = vpack.c.bf16 %v920_v3, %v916_v9 }
 0x132   :  { %v752_v11 = vpop.f32.mrf.mxu0 }
 0x133   :  { %v753_v12 = vadd.f32 %v752_v11, %v175_v35  ;;  %v804_v13 = vadd.f32 %v803_v58, %v751_v8  ;;  %v933_v14 = vpack.c.bf16 %v921_v7, %v917_v6  ;;  %v924_v20 = vmax.f32 %v802_v10, 0.0 }
 0x134   :  { %v754_v16 = vpop.f32.mrf.mxu0 }
 0x135   :  { %v755_v18 = vadd.f32 %v754_v16, %v179_v49  ;;  %v806_v19 = vadd.f32 %v805_v5, %v753_v12  ;;  %1368 = vmatprep.mubr.bf16.mxu0 %v933_v14  ;;  %v925_v21 = vmax.f32 %v804_v13, 0.0  ;;  %v2131_v14 = vld [vmem:[#allocation6 + $0x78] sm:$0xff]   ;;  %v2133_v16 = vld [vmem:[#allocation6 + $0x70] sm:$0xff]  }
 0x136   :  { %1369 = vmatmul.mubr.bf16.vlgmr.msra.gmra.mxu0 %v932_v15  ;;  %v2132_v15 = vld [vmem:[#allocation6 + $0x38] sm:$0xff]   ;;  %1831 = vmatprep.subr.bf16.mxu0 %v2131_v14 }
 0x137   :  { %v928_v22 = vmax.f32 %v806_v19, 0.0  ;;  %v808_v23 = vadd.f32 %v807_v17, %v755_v18  ;;  %1859 = vmatprep.subr.bf16.mxu1 %v2131_v14  ;;  %1832 = vmatpush3.bf16.msra.mxu0 %v2132_v15  ;;  %v2134_v17 = vld [vmem:[#allocation6 + $0x30] sm:$0xff]   ;;  %v2135_v18 = vld [vmem:[#allocation6 + $0x68] sm:$0xff]   ;;  %v1814_v14 = vld [vmem:[%s2636_s6] ss:$0 sm:$0xff] }
 0x138   :  { %1833 = vmatprep.subr.bf16.mxu0 %v2133_v16  ;;  %v2136_v19 = vld [vmem:[#allocation6 + $0x28] sm:$0xff]  }
 0x139   :  { %v929_v24 = vmax.f32 %v808_v23, 0.0  ;;  %v936_v25 = vpack.c.bf16 %v928_v22, %v924_v20  ;;  %v2137_v20 = vld [vmem:[#allocation6 + $0x60] sm:$0xff]   ;;  %v2139_v22 = vld [vmem:[#allocation6 + $0x58] sm:$0xff]  }
 0x13a   :  { %v2140_v23 = vld [vmem:[#allocation6 + $0x18] sm:$0xff]  }
 0x13b   :  { %v937_v26 = vpack.c.bf16 %v929_v24, %v925_v21  ;;  %1834 = vmatpush3.bf16.msra.mxu0 %v2134_v17  ;;  %v2138_v21 = vld [vmem:[#allocation6 + $0x20] sm:$0xff]   ;;  %v2141_v24 = vld [vmem:[#allocation6 + $0x50] sm:$0xff]  }
 0x13c   :  { %1835 = vmatprep.subr.bf16.mxu0 %v2135_v18 }
 0x13d   :  { %1378 = vmatprep.mubr.bf16.mxu0 %v937_v26  ;;  %v2143_v26 = vld [vmem:[#allocation6 + $0x48] sm:$0xff]  }
 0x13e   :  { %1379 = vmatmul.mubr.bf16.gmra.mxu0 %v936_v25  ;;  %v2142_v25 = vld [vmem:[#allocation6 + $0x10] sm:$0xff]  }
 0x13f   :  { %1836 = vmatpush3.bf16.msra.mxu0 %v2136_v19 }
 0x140   :  { %1837 = vmatprep.subr.bf16.mxu0 %v2137_v20 }
 0x143   :  { %1838 = vmatpush3.bf16.msra.mxu0 %v2138_v21 }
 0x144   :  { %1839 = vmatprep.subr.bf16.mxu0 %v2139_v22 }
 0x146   :  { %v897_v32 = vpop.f32.mrf.mxu0 }
 0x147   :  { %v844_v31 = vpop.f32.mrf.mxu1  ;;  %1840 = vmatpush3.bf16.msra.mxu0 %v2140_v23 }
 0x148   :  { %v899_v34 = vpop.f32.mrf.mxu0  ;;  %v845_v37 = vadd.f32 %v844_v31, %v183_v30  ;;  %1841 = vmatprep.subr.bf16.mxu0 %v2141_v24 }
 0x149   :  { %v846_v33 = vpop.f32.mrf.mxu1 }
 0x14a   :  { %v847_v36 = vadd.f32 %v846_v33, %v187_v29  ;;  %v901_v39 = vpop.f32.mrf.mxu0  ;;  %v898_v50 = vadd.f32 %v897_v32, %v845_v37 }
 0x14b   :  { %v848_v38 = vpop.f32.mrf.mxu1  ;;  %1842 = vmatpush3.bf16.msra.mxu0 %v2142_v25 }
 0x14c   :  { %v849_v40 = vadd.f32 %v848_v38, %v183_v30  ;;  %v903_v42 = vpop.f32.mrf.mxu0  ;;  %v900_v43 = vadd.f32 %v899_v34, %v847_v36  ;;  %v918_v57 = vmax.f32 %v898_v50, 0.0  ;;  %1843 = vmatprep.subr.bf16.mxu0 %v2143_v26  ;;  %v1004_v34 = vld [vmem:[#allocation4] sm:$0x3] }
 0x14d   :  { %v850_v41 = vpop.f32.mrf.mxu1  ;;  %v1013_v37 = vrot.slane %v1004_v34, %v178_v45  ;;  %v1009_v38 = vrot.slane %v1004_v34, %v174_v47 }
 0x14e   :  { %v902_v46 = vadd.f32 %v901_v39, %v849_v40  ;;  %v851_v49 = vadd.f32 %v850_v41, %v187_v29  ;;  %v907_v0 = vpop.f32.mrf.mxu0  ;;  %v919_v54 = vmax.f32 %v900_v43, 0.0 }
 0x14f   :  { %v854_v35 = vpop.f32.mrf.mxu1  ;;  %1844 = vmatpush3.bf16.msra.mxu0 %v2144_v27 }
 0x150   :  { %v904_v51 = vadd.f32 %v903_v42, %v851_v49  ;;  %v922_v52 = vmax.f32 %v902_v46, 0.0  ;;  %v909_v53 = vpop.f32.mrf.mxu0  ;;  %v855_v58 = vadd.f32 %v854_v35, %v183_v30  ;;  %1845 = vmatprep.subr.bf16.mxu0 %v2145_v28 }
 0x151   :  { %v856_v48 = vpop.f32.mrf.mxu1 }
 0x152   :  { %v923_v55 = vmax.f32 %v904_v51, 0.0  ;;  %v857_v56 = vadd.f32 %v856_v48, %v187_v29  ;;  %v911_v60 = vpop.f32.mrf.mxu0  ;;  %v934_v63 = vpack.c.bf16 %v922_v52, %v918_v57  ;;  %v908_v5 = vadd.f32 %v907_v0, %v855_v58 }
 0x153   :  { %v858_v59 = vpop.f32.mrf.mxu1 }
 0x154   :  { %v935_v61 = vpack.c.bf16 %v923_v55, %v919_v54  ;;  %v859_v62 = vadd.f32 %v858_v59, %v183_v30  ;;  %v910_v2 = vadd.f32 %v909_v53, %v857_v56  ;;  %v913_v6 = vpop.f32.mrf.mxu0  ;;  %v926_v11 = vmax.f32 %v908_v5, 0.0 }
 0x155   :  { %v860_v1 = vpop.f32.mrf.mxu1 }
 0x156   :  { %v912_v3 = vadd.f32 %v911_v60, %v859_v62  ;;  %v861_v4 = vadd.f32 %v860_v1, %v187_v29  ;;  %1421 = vmatprep.mubr.bf16.mxu1 %v935_v61  ;;  %v927_v9 = vmax.f32 %v910_v2, 0.0  ;;  %v2146_v29 = vld [vmem:[#allocation6] sm:$0xff]  }
 0x157   :  { %1422 = vmatmul.mubr.bf16.vlgmr.msra.gmra.mxu1 %v934_v63  ;;  %1846 = vmatpush3.bf16.msra.mxu0 %v2146_v29 }
 0x158   :  { %v914_v7 = vadd.f32 %v913_v6, %v861_v4  ;;  %v930_v8 = vmax.f32 %v912_v3, 0.0  ;;  %1867 = vmatpush3.bf16.msra.mxu1 %v2132_v15 }
 0x159   :  { %1860 = vmatprep.subr.bf16.mxu1 %v2133_v16 }
 0x15a   :  { %v931_v10 = vmax.f32 %v914_v7, 0.0  ;;  %v938_v13 = vpack.c.bf16 %v930_v8, %v926_v11 }
 0x15c   :  { %v939_v12 = vpack.c.bf16 %v931_v10, %v927_v9  ;;  %1868 = vmatpush3.bf16.msra.mxu1 %v2134_v17 }
 0x15d   :  { %1861 = vmatprep.subr.bf16.mxu1 %v2135_v18 }
 0x15e   :  { %1431 = vmatprep.mubr.bf16.mxu1 %v939_v12 }
 0x15f   :  { %1432 = vmatmul.mubr.bf16.gmra.mxu1 %v938_v13 }
 0x160   :  { %1869 = vmatpush3.bf16.msra.mxu1 %v2136_v19 }
 0x161   :  { %1862 = vmatprep.subr.bf16.mxu1 %v2137_v20 }
 0x164   :  { %1870 = vmatpush3.bf16.msra.mxu1 %v2138_v21 }
 0x165   :  { %1863 = vmatprep.subr.bf16.mxu1 %v2139_v22 }
 0x168   :  { %1871 = vmatpush3.bf16.msra.mxu1 %v2140_v23 }
 0x169   :  { %1864 = vmatprep.subr.bf16.mxu1 %v2141_v24 }
 0x16c   :  { %1872 = vmatpush3.bf16.msra.mxu1 %v2142_v25 }
 0x16d   :  { %1865 = vmatprep.subr.bf16.mxu1 %v2143_v26 }
 0x170   :  { %1873 = vmatpush3.bf16.msra.mxu1 %v2144_v27 }
 0x171   :  { %1866 = vmatprep.subr.bf16.mxu1 %v2145_v28 }
 0x174   :  { %1874 = vmatpush3.bf16.msra.mxu1 %v2146_v29 }
 0x1f6   :  { %v1370_v30 = vpop.f32.mrf.mxu0 }
 0x1f7   :  { %v1371_v46 = vadd.f32 %v1370_v30, %v1009_v38 }
 0x1f8   :  { %v1372_v31 = vpop.f32.mrf.mxu0 }
 0x1f9   :  { %v1373_v42 = vadd.f32 %v1372_v31, %v1013_v37 }
 0x1fa   :  { %v1374_v32 = vpop.f32.mrf.mxu0 }
 0x1fb   :  { %v1375_v43 = vadd.f32 %v1374_v32, %v1009_v38 }
 0x1fc   :  { %v1376_v33 = vpop.f32.mrf.mxu0 }
 0x1fd   :  { %v1377_v50 = vadd.f32 %v1376_v33, %v1013_v37 }
 0x1fe   :  { %v1380_v36 = vpop.f32.mrf.mxu0 }
 0x1ff   :  { %v1381_v61 = vadd.f32 %v1380_v36, %v1009_v38 }
 0x200   :  { %v1382_v40 = vpop.f32.mrf.mxu0 }
 0x201   :  { %v1383_v58 = vadd.f32 %v1382_v40, %v1013_v37 }
 0x202   :  { %v1384_v51 = vpop.f32.mrf.mxu0 }
 0x203   :  { %v1385_v59 = vadd.f32 %v1384_v51, %v1009_v38 }
 0x204   :  { %v1386_v44 = vpop.f32.mrf.mxu0 }
 0x205   :  { %v1387_v1 = vadd.f32 %v1386_v44, %v1013_v37 }
 0x217   :  { %v1423_v39 = vpop.f32.mrf.mxu1 }
 0x218   :  { %v1424_v52 = vadd.f32 %v1423_v39, %v1371_v46 }
 0x219   :  { %v1425_v41 = vpop.f32.mrf.mxu1 }
 0x21a   :  { %v1426_v35 = vadd.f32 %v1425_v41, %v1373_v42  ;;  %v1442_v47 = vmax.f32 %v1424_v52, 0.0 }
 0x21b   :  { %v1427_v49 = vpop.f32.mrf.mxu1 }
 0x21c   :  { %v1428_v0 = vadd.f32 %v1427_v49, %v1375_v43  ;;  %v1443_v45 = vmax.f32 %v1426_v35, 0.0 }
 0x21d   :  { %v1429_v48 = vpop.f32.mrf.mxu1 }
 0x21e   :  { %v1430_v53 = vadd.f32 %v1429_v48, %v1377_v50  ;;  %v1444_v54 = vmax.f32 %v1428_v0, 0.0 }
 0x21f   :  { %v1433_v55 = vpop.f32.mrf.mxu1 }
 0x220   :  { %v1445_v56 = vmax.f32 %v1430_v53, 0.0  ;;  %v1450_v62 = vpack.c.bf16 %v1444_v54, %v1442_v47  ;;  %v1434_v4 = vadd.f32 %v1433_v55, %v1381_v61 }
 0x221   :  { %v1435_v57 = vpop.f32.mrf.mxu1 }
 0x222   :  { %v1451_v60 = vpack.c.bf16 %v1445_v56, %v1443_v45  ;;  %v1436_v2 = vadd.f32 %v1435_v57, %v1383_v58  ;;  %v1446_v10 = vmax.f32 %v1434_v4, 0.0 }
 0x223   :  { %v1437_v63 = vpop.f32.mrf.mxu1 }
 0x224   :  { %v1438_v3 = vadd.f32 %v1437_v63, %v1385_v59  ;;  %1621 = vmatprep.mubr.bf16.mxu0 %v1451_v60  ;;  %v1447_v8 = vmax.f32 %v1436_v2, 0.0 }
 0x225   :  { %v1439_v5 = vpop.f32.mrf.mxu1  ;;  %1622 = vmatmul.mubr.bf16.vlgmr.msra.gmra.mxu0 %v1450_v62 }
 0x226   :  { %v1440_v6 = vadd.f32 %v1439_v5, %v1387_v1  ;;  %v1448_v7 = vmax.f32 %v1438_v3, 0.0 }
 0x228   :  { %v1449_v9 = vmax.f32 %v1440_v6, 0.0  ;;  %v1452_v12 = vpack.c.bf16 %v1448_v7, %v1446_v10 }
 0x22a   :  { %v1453_v11 = vpack.c.bf16 %v1449_v9, %v1447_v8 }
 0x22c   :  { %1629 = vmatprep.mubr.bf16.mxu1 %v1453_v11 }
 0x22d   :  { %1630 = vmatmul.mubr.bf16.vlgmr.msra.gmra.mxu1 %v1452_v12 }
 0x2e5   :  { %v1847_v13 = vpop.f32.mrf.mxu0 }
 0x2e7   :  { %v1848_v15 = vpop.f32.mrf.mxu0 }
 0x2e8   :  { %v1849_v16 = vadd.f32 %v1848_v15, %v1847_v13 }
 0x2e9   :  { %v1850_v17 = vpop.f32.mrf.mxu0 }
 0x2ea   :  { %v1624_v18 = vadd.f32 %v1849_v16, %v1814_v14 }
 0x2eb   :  { %v1851_v19 = vpop.f32.mrf.mxu0 }
 0x2ec   :  { %1638 = vst [vmem:[%s2637_s7] sm:$0xff] %v1624_v18  ;;  %v1852_v20 = vadd.f32 %v1851_v19, %v1850_v17 }
 0x2ed   :  { %v1853_v21 = vpop.f32.mrf.mxu1 }
 0x2ee   :  { %v1627_v22 = vadd.f32 %v1852_v20, %v1814_v14 }
 0x2ef   :  { %v1854_v23 = vpop.f32.mrf.mxu1 }
 0x2f0   :  { %1639 = vst [vmem:[%s2637_s7 + $0x8] sm:$0xff] %v1627_v22  ;;  %v1855_v24 = vadd.f32 %v1854_v23, %v1853_v21 }
 0x2f1   :  { %v1856_v25 = vpop.f32.mrf.mxu1 }
 0x2f2   :  { %v1632_v26 = vadd.f32 %v1855_v24, %v1814_v14 }
 0x2f3   :  { %v1857_v27 = vpop.f32.mrf.mxu1 }
 0x2f4   :  { %1640 = vst [vmem:[%s2637_s7 + $0x10] sm:$0xff] %v1632_v26  ;;  %v1858_v28 = vadd.f32 %v1857_v27, %v1856_v25 }
 0x2f6   :  { %v1635_v29 = vadd.f32 %v1858_v28, %v1814_v14 }
 0x2f8   :  { %1641 = vst [vmem:[%s2637_s7 + $0x18] sm:$0xff] %v1635_v29 }
 0x2f9   :  { %1646 = vsyncpa [#allocation3], 1 }
 0x2fa   :  { %1647 = vsyncpa [#allocation5], 1 }

</bundles_post_ra>
